<compile_context>
chip_gen: v5e
topology: v5e:2x2
jax: 0.10.0
libtpu: 0.0.40
codegen_flags: <defaults>
</compile_context>

<pallas_src>
import jax
import jax.numpy as jnp
from jax.experimental import pallas as pl
from jax.experimental.pallas import tpu as pltpu


def _softplus(x):
    # nn.Softplus(beta=1, threshold=20)
    return jnp.where(x > 20.0, x, jnp.log1p(jnp.exp(jnp.minimum(x, 20.0))))


def _round_up(x, m):
    return ((x + m - 1) // m) * m


# ----------------------------------------------------------------------------
# Kernel
# ----------------------------------------------------------------------------
def symmetric_kernel(sp_ref, w1_ref, b1_ref, w2_ref, b2_ref, w3_ref, b3_ref,
                     sps_ref, out_ref):
    sp = sp_ref[...]                                                     # (TB, 27)

    # Layer 1 (both regular and sign-folded inverse paths in one dot).
    z1 = jnp.dot(sp, w1_ref[...], preferred_element_type=jnp.float32) + b1_ref[...]   # (TB, 100)
    p = z1[:, 0:50] * z1[:, 50:100]                                      # (TB, 50) = [p_reg | p_inv]

    # Layer 2 (block-diagonal wl) + Softsign.
    h = jnp.dot(p, w2_ref[...], preferred_element_type=jnp.float32) + b2_ref[...]      # (TB, 50)
    h = h / (1.0 + jnp.abs(h))

    # Layer 3 with the +/- output combination folded into the weights.
    comb = jnp.dot(h, w3_ref[...], preferred_element_type=jnp.float32) + b3_ref[...]   # (TB, 16)

    c = comb[:, 0:13]
    controls = c / (1.0 + jnp.abs(c))                                    # Softsign
    loc = _softplus(comb[:, 13:14]) / _softplus(comb[:, 14:15])          # (TB, 1)
    std = sps_ref[0] * loc                                               # softplus(scale) * loc

    # Single lane-packed output slab: controls | loc | std | zero-pad.
    out_ref[...] = jnp.concatenate([controls, loc, std, jnp.zeros_like(loc)], axis=1)


# ----------------------------------------------------------------------------
# Host-side weight fusion
# ----------------------------------------------------------------------------
def fuse_params(params):
    (wmx, bmx, wnx, bnx, wmy, bmy, wny, bny,
     wmz, bmz, wnz, bnz, wl, bl, wo, bo, scale) = params

    # Sign mask of the torch in-place negations over the flattened (3,9) input:
    #   spatial_inv[:, 0] *= -1 ; spatial_inv[:, :, 7] *= -1 ; spatial_inv[:, :, 4:6] *= -1
    row = jnp.arange(27) // 9
    col = jnp.arange(27) % 9
    sign = (jnp.where(row == 0, -1.0, 1.0)
            * jnp.where(col == 7, -1.0, 1.0)
            * jnp.where((col >= 4) & (col < 6), -1.0, 1.0)).astype(jnp.float32)

    # Block-diagonal layer-1 weights: multiplier path and normal path, (27, 25) each.
    w1m = jnp.zeros((27, 25), jnp.float32)
    w1m = w1m.at[0:6, 0:10].set(wmx).at[9:15, 10:20].set(wmy).at[18:24, 20:25].set(wmz)
    w1n = jnp.zeros((27, 25), jnp.float32)
    w1n = w1n.at[6:9, 0:10].set(wnx).at[15:18, 10:20].set(wny).at[24:27, 20:25].set(wnz)
    b1m = jnp.concatenate([bmx, bmy, bmz], axis=1)                       # (1, 25)
    b1n = jnp.concatenate([bnx, bny, bnz], axis=1)                       # (1, 25)

    s = sign[:, None]
    w1 = jnp.concatenate([w1m, s * w1m, w1n, s * w1n], axis=1)           # (27, 100)
    b1 = jnp.concatenate([b1m, b1m, b1n, b1n], axis=1)                   # (1, 100)

    w2 = jnp.zeros((50, 50), jnp.float32)
    w2 = w2.at[0:25, 0:25].set(wl).at[25:50, 25:50].set(wl)              # (50, 50)
    b2 = jnp.concatenate([bl, bl], axis=1)                               # (1, 50)

    # output[:, 0:9] += inv ; output[:, 9:13] -= inv ; output[:, 13:15] += inv
    out_sign = jnp.concatenate([jnp.ones(9), -jnp.ones(4), jnp.ones(2)]).astype(jnp.float32)
    w3 = jnp.concatenate([wo, wo * out_sign[None, :]], axis=0)           # (50, 15)
    w3 = jnp.pad(w3, ((0, 0), (0, 1)))                                   # (50, 16)
    b3 = jnp.pad(bo * (1.0 + out_sign)[None, :], ((0, 0), (0, 1)))       # (1, 16)

    sps = _softplus(scale.astype(jnp.float32)).reshape(1)                # softplus(scale), (1,)
    return w1, b1, w2, b2, w3, b3, sps


# ----------------------------------------------------------------------------
# Wrapper
# ----------------------------------------------------------------------------
def symmetric_model(spatial, car_stats, params, *, block_b=512):
    """spatial: (B, 3, 9) f32; car_stats: (B, 5) f32 (unused, as in torch)."""
    del car_stats
    B = spatial.shape[0]
    w1, b1, w2, b2, w3, b3, sps = fuse_params(params)

    # Batch tiling: tile must be a multiple of 8 sublanes; pad B up to a multiple.
    tb = min(block_b, _round_up(B, 8))
    Bp = _round_up(B, tb)
    sp = spatial.reshape(B, 27).astype(jnp.float32)
    if Bp != B:
        sp = jnp.pad(sp, ((0, Bp - B), (0, 0)))

    def const2(i):
        return (0, 0)

    def w_spec(a):
        return pl.BlockSpec(a.shape, const2)

    out = pl.pallas_call(
        symmetric_kernel,
        out_shape=jax.ShapeDtypeStruct((Bp, 16), jnp.float32),
        grid=(Bp // tb,),
        in_specs=[
            pl.BlockSpec((tb, 27), lambda i: (i, 0)),
            w_spec(w1), w_spec(b1), w_spec(w2), w_spec(b2), w_spec(w3), w_spec(b3),
            pl.BlockSpec((1,), lambda i: (0,),
                         memory_space=pltpu.MemorySpace.SMEM),
        ],
        out_specs=pl.BlockSpec((tb, 16), lambda i: (i, 0)),
        compiler_params=pltpu.CompilerParams(
            dimension_semantics=("parallel",)),
    )(sp, w1, b1, w2, b2, w3, b3, sps)

    controls = out[:B, 0:13]
    loc = out[:B, 13:14]
    std = out[:B, 14:15]
    return controls, (loc, std)


# ----------------------------------------------------------------------------
# Params / reference
# ----------------------------------------------------------------------------
def init_params(key):
    """Deterministic synthetic params matching the torch module's shapes."""
    def lin(k, fan_in, fan_out):
        k1, k2 = jax.random.split(k)
        bound = 1.0 / jnp.sqrt(jnp.float32(fan_in))
        w = jax.random.uniform(k1, (fan_in, fan_out), jnp.float32, -bound, bound)
        b = jax.random.uniform(k2, (1, fan_out), jnp.float32, -bound, bound)
        return w, b
    keys = jax.random.split(key, 8)
    wmx, bmx = lin(keys[0], 6, 10)   # input_x.multiplier
    wnx, bnx = lin(keys[1], 3, 10)   # input_x.normal
    wmy, bmy = lin(keys[2], 6, 10)   # input_y.multiplier
    wny, bny = lin(keys[3], 3, 10)   # input_y.normal
    wmz, bmz = lin(keys[4], 6, 5)    # input_z.multiplier
    wnz, bnz = lin(keys[5], 3, 5)    # input_z.normal
    wl, bl = lin(keys[6], 25, 25)    # actor.linear
    wo, bo = lin(keys[7], 25, 15)    # actor.output
    scale = jnp.ones((1, 1), jnp.float32)  # nn.Parameter(torch.ones(1))
    return [wmx, bmx, wnx, bnx, wmy, bmy, wny, bny,
            wmz, bmz, wnz, bnz, wl, bl, wo, bo, scale]


def reference(spatial, params):
    """Pure-JAX reference of the torch forward (for correctness check)."""
    (wmx, bmx, wnx, bnx, wmy, bmy, wny, bny,
     wmz, bmz, wnz, bnz, wl, bl, wo, bo, scale) = params

    def actor(s):
        x, y, z = s[:, 0], s[:, 1], s[:, 2]
        px = (x[:, 0:6] @ wmx + bmx) * (x[:, 6:9] @ wnx + bnx)
        py = (y[:, 0:6] @ wmy + bmy) * (y[:, 6:9] @ wny + bny)
        pz = (z[:, 0:6] @ wmz + bmz) * (z[:, 6:9] @ wnz + bnz)
        h = jnp.concatenate([px, py, pz], axis=1) @ wl + bl
        h = h / (1.0 + jnp.abs(h))
        return h @ wo + bo

    sp_inv = spatial.at[:, 0].multiply(-1.0)
    sp_inv = sp_inv.at[:, :, 7].multiply(-1.0)
    sp_inv = sp_inv.at[:, :, 4:6].multiply(-1.0)
    out, oinv = actor(spatial), actor(sp_inv)
    comb = jnp.concatenate([out[:, 0:9] + oinv[:, 0:9],
                            out[:, 9:13] - oinv[:, 9:13],
                            out[:, 13:15] + oinv[:, 13:15]], axis=1)
    controls = comb[:, 0:13] / (1.0 + jnp.abs(comb[:, 0:13]))
    loc = _softplus(comb[:, 13:14]) / _softplus(comb[:, 14:15])
    std = _softplus(scale) * loc
    return controls, loc, std


if __name__ == "__main__":
    key = jax.random.PRNGKey(0)
    k_sp, k_cs, k_p = jax.random.split(key, 3)

    params = init_params(k_p)

    # Small demo batch.
    B = 8
    spatial = jax.random.normal(k_sp, (B, 3, 9), jnp.float32)
    car_stats = jax.random.normal(k_cs, (B, 5), jnp.float32)

    controls, (loc, std) = symmetric_model(spatial, car_stats, params)
    controls = jax.block_until_ready(controls)
    loc = jax.block_until_ready(loc)
    std = jax.block_until_ready(std)

    ref_c, ref_loc, ref_std = reference(spatial, params)
    assert jnp.allclose(controls, ref_c, rtol=1e-3, atol=1e-3)
    assert jnp.allclose(loc, ref_loc, rtol=1e-3, atol=1e-3)
    assert jnp.allclose(std, ref_std, rtol=1e-3, atol=1e-3)

    # Second check exercising the batch grid + tail padding path.
    B2 = 50
    spatial2 = jax.random.normal(jax.random.PRNGKey(1), (B2, 3, 9), jnp.float32)
    car_stats2 = jnp.zeros((B2, 5), jnp.float32)
    c2, (l2, s2) = symmetric_model(spatial2, car_stats2, params, block_b=16)
    c2 = jax.block_until_ready(c2)
    rc2, rl2, rs2 = reference(spatial2, params)
    assert jnp.allclose(c2, rc2, rtol=1e-3, atol=1e-3)
    assert jnp.allclose(l2, rl2, rtol=1e-3, atol=1e-3)
    assert jnp.allclose(s2, rs2, rtol=1e-3, atol=1e-3)

    print("KERNEL_OK")
</pallas_src>

<mosaic_0001>
module attributes {stable_mosaic.version = 11 : i64} {
  func.func @symmetric_kernel(%arg0: i32, %arg1: memref<8x27xf32, #tpu.memory_space<vmem>>, %arg2: memref<27x100xf32, #tpu.memory_space<vmem>>, %arg3: memref<1x100xf32, #tpu.memory_space<vmem>>, %arg4: memref<50x50xf32, #tpu.memory_space<vmem>>, %arg5: memref<1x50xf32, #tpu.memory_space<vmem>>, %arg6: memref<50x16xf32, #tpu.memory_space<vmem>>, %arg7: memref<1x16xf32, #tpu.memory_space<vmem>>, %arg8: memref<1xf32, #tpu.memory_space<smem>>, %arg9: memref<8x16xf32, #tpu.memory_space<vmem>>) attributes {dimension_semantics = [#tpu.dimension_semantics<parallel>], iteration_bounds = array<i64: 1>, scalar_prefetch = 0 : i64, scratch_operands = 0 : i64, tpu.core_type = #tpu.core_type<tc>, window_params = [{transform_indices = @transform_0, window_bounds = array<i64: 8, 27>}, {pipeline_mode = #tpu.pipeline_mode<synchronous>, transform_indices = @transform_1, window_bounds = array<i64: 27, 100>}, {pipeline_mode = #tpu.pipeline_mode<synchronous>, transform_indices = @transform_2, window_bounds = array<i64: 1, 100>}, {pipeline_mode = #tpu.pipeline_mode<synchronous>, transform_indices = @transform_3, window_bounds = array<i64: 50, 50>}, {pipeline_mode = #tpu.pipeline_mode<synchronous>, transform_indices = @transform_4, window_bounds = array<i64: 1, 50>}, {pipeline_mode = #tpu.pipeline_mode<synchronous>, transform_indices = @transform_5, window_bounds = array<i64: 50, 16>}, {pipeline_mode = #tpu.pipeline_mode<synchronous>, transform_indices = @transform_6, window_bounds = array<i64: 1, 16>}, {transform_indices = @transform_7, window_bounds = array<i64: 1>}, {transform_indices = @transform_8, window_bounds = array<i64: 8, 16>}]} {
    %c0 = arith.constant 0 : index
    %c0_0 = arith.constant 0 : index
    %0 = vector.load %arg1[%c0, %c0_0] : memref<8x27xf32, #tpu.memory_space<vmem>>, vector<8x27xf32>
    %c0_1 = arith.constant 0 : index
    %c0_2 = arith.constant 0 : index
    %1 = vector.load %arg2[%c0_1, %c0_2] : memref<27x100xf32, #tpu.memory_space<vmem>>, vector<27x100xf32>
    %cst = arith.constant dense<0.000000e+00> : vector<8x100xf32>
    %2 = tpu.matmul %0, %1, %cst {dimension_numbers = #tpu.dot_dimension_numbers<[1], [0], [0], [1], [0, 0, 1, 1], [], []>} : vector<8x27xf32>, vector<27x100xf32>, vector<8x100xf32> -> vector<8x100xf32>
    %c0_3 = arith.constant 0 : index
    %c0_4 = arith.constant 0 : index
    %3 = vector.load %arg3[%c0_3, %c0_4] : memref<1x100xf32, #tpu.memory_space<vmem>>, vector<1x100xf32>
    %4 = vector.broadcast %3 : vector<1x100xf32> to vector<8x100xf32>
    %5 = arith.addf %2, %4 : vector<8x100xf32>
    %6 = vector.extract_strided_slice %5 {offsets = [0, 0], sizes = [8, 50], strides = [1, 1]} : vector<8x100xf32> to vector<8x50xf32>
    %7 = vector.extract_strided_slice %5 {offsets = [0, 50], sizes = [8, 50], strides = [1, 1]} : vector<8x100xf32> to vector<8x50xf32>
    %8 = arith.mulf %6, %7 : vector<8x50xf32>
    %c0_5 = arith.constant 0 : index
    %c0_6 = arith.constant 0 : index
    %9 = vector.load %arg4[%c0_5, %c0_6] : memref<50x50xf32, #tpu.memory_space<vmem>>, vector<50x50xf32>
    %cst_7 = arith.constant dense<0.000000e+00> : vector<8x50xf32>
    %10 = tpu.matmul %8, %9, %cst_7 {dimension_numbers = #tpu.dot_dimension_numbers<[1], [0], [0], [1], [0, 0, 1, 1], [], []>} : vector<8x50xf32>, vector<50x50xf32>, vector<8x50xf32> -> vector<8x50xf32>
    %c0_8 = arith.constant 0 : index
    %c0_9 = arith.constant 0 : index
    %11 = vector.load %arg5[%c0_8, %c0_9] : memref<1x50xf32, #tpu.memory_space<vmem>>, vector<1x50xf32>
    %12 = vector.broadcast %11 : vector<1x50xf32> to vector<8x50xf32>
    %13 = arith.addf %10, %12 : vector<8x50xf32>
    %14 = math.absf %13 : vector<8x50xf32>
    %cst_10 = arith.constant 1.000000e+00 : f32
    %15 = vector.broadcast %cst_10 : f32 to vector<8x50xf32>
    %16 = arith.addf %15, %14 : vector<8x50xf32>
    %17 = arith.divf %13, %16 : vector<8x50xf32>
    %c0_11 = arith.constant 0 : index
    %c0_12 = arith.constant 0 : index
    %18 = vector.load %arg6[%c0_11, %c0_12] : memref<50x16xf32, #tpu.memory_space<vmem>>, vector<50x16xf32>
    %cst_13 = arith.constant dense<0.000000e+00> : vector<8x16xf32>
    %19 = tpu.matmul %17, %18, %cst_13 {dimension_numbers = #tpu.dot_dimension_numbers<[1], [0], [0], [1], [0, 0, 1, 1], [], []>} : vector<8x50xf32>, vector<50x16xf32>, vector<8x16xf32> -> vector<8x16xf32>
    %c0_14 = arith.constant 0 : index
    %c0_15 = arith.constant 0 : index
    %20 = vector.load %arg7[%c0_14, %c0_15] : memref<1x16xf32, #tpu.memory_space<vmem>>, vector<1x16xf32>
    %21 = vector.broadcast %20 : vector<1x16xf32> to vector<8x16xf32>
    %22 = arith.addf %19, %21 : vector<8x16xf32>
    %23 = vector.extract_strided_slice %22 {offsets = [0, 0], sizes = [8, 13], strides = [1, 1]} : vector<8x16xf32> to vector<8x13xf32>
    %24 = math.absf %23 : vector<8x13xf32>
    %cst_16 = arith.constant 1.000000e+00 : f32
    %25 = vector.broadcast %cst_16 : f32 to vector<8x13xf32>
    %26 = arith.addf %25, %24 : vector<8x13xf32>
    %27 = arith.divf %23, %26 : vector<8x13xf32>
    %28 = vector.extract_strided_slice %22 {offsets = [0, 13], sizes = [8, 1], strides = [1, 1]} : vector<8x16xf32> to vector<8x1xf32>
    %cst_17 = arith.constant 2.000000e+01 : f32
    %29 = vector.broadcast %cst_17 : f32 to vector<8x1xf32>
    %30 = arith.cmpf ogt, %28, %29 : vector<8x1xf32>
    %cst_18 = arith.constant 2.000000e+01 : f32
    %31 = vector.broadcast %cst_18 : f32 to vector<8x1xf32>
    %32 = arith.minimumf %28, %31 : vector<8x1xf32>
    %33 = math.exp %32 : vector<8x1xf32>
    %34 = math.log1p %33 : vector<8x1xf32>
    %35 = arith.select %30, %28, %34 : vector<8x1xi1>, vector<8x1xf32>
    %36 = vector.extract_strided_slice %22 {offsets = [0, 14], sizes = [8, 1], strides = [1, 1]} : vector<8x16xf32> to vector<8x1xf32>
    %cst_19 = arith.constant 2.000000e+01 : f32
    %37 = vector.broadcast %cst_19 : f32 to vector<8x1xf32>
    %38 = arith.cmpf ogt, %36, %37 : vector<8x1xf32>
    %cst_20 = arith.constant 2.000000e+01 : f32
    %39 = vector.broadcast %cst_20 : f32 to vector<8x1xf32>
    %40 = arith.minimumf %36, %39 : vector<8x1xf32>
    %41 = math.exp %40 : vector<8x1xf32>
    %42 = math.log1p %41 : vector<8x1xf32>
    %43 = arith.select %38, %36, %42 : vector<8x1xi1>, vector<8x1xf32>
    %44 = arith.divf %35, %43 : vector<8x1xf32>
    %c0_21 = arith.constant 0 : index
    %45 = memref.load %arg8[%c0_21] : memref<1xf32, #tpu.memory_space<smem>>
    %46 = vector.broadcast %45 : f32 to vector<8x1xf32>
    %47 = arith.mulf %46, %44 : vector<8x1xf32>
    %cst_22 = arith.constant 0.000000e+00 : f32
    %48 = vector.broadcast %cst_22 : f32 to vector<8x1xf32>
    %49 = tpu.concatenate %27, %44, %47, %48 in 1 : vector<8x13xf32>, vector<8x1xf32>, vector<8x1xf32>, vector<8x1xf32> -> vector<8x16xf32>
    %c0_23 = arith.constant 0 : index
    %c0_24 = arith.constant 0 : index
    %50 = vector.load %arg9[%c0_23, %c0_24] : memref<8x16xf32, #tpu.memory_space<vmem>>, vector<8x16xf32>
    tpu.vector_store %arg9[%c0_23, %c0_24], %49 {strides = array<i32>} : memref<8x16xf32, #tpu.memory_space<vmem>>, vector<8x16xf32>,
    return
  }
  func.func @transform_0(%arg0: i32) -> (i32, i32) {
    %c0_i32 = arith.constant 0 : i32
    %c0_i32_0 = arith.constant 0 : i32
    return %arg0, %c0_i32 : i32, i32
  }
  func.func @transform_1(%arg0: i32) -> (i32, i32) {
    %c0_i32 = arith.constant 0 : i32
    %c0_i32_0 = arith.constant 0 : i32
    %c0_i32_1 = arith.constant 0 : i32
    return %c0_i32, %c0_i32_0 : i32, i32
  }
  func.func @transform_2(%arg0: i32) -> (i32, i32) {
    %c0_i32 = arith.constant 0 : i32
    %c0_i32_0 = arith.constant 0 : i32
    %c0_i32_1 = arith.constant 0 : i32
    return %c0_i32, %c0_i32_0 : i32, i32
  }
  func.func @transform_3(%arg0: i32) -> (i32, i32) {
    %c0_i32 = arith.constant 0 : i32
    %c0_i32_0 = arith.constant 0 : i32
    %c0_i32_1 = arith.constant 0 : i32
    return %c0_i32, %c0_i32_0 : i32, i32
  }
  func.func @transform_4(%arg0: i32) -> (i32, i32) {
    %c0_i32 = arith.constant 0 : i32
    %c0_i32_0 = arith.constant 0 : i32
    %c0_i32_1 = arith.constant 0 : i32
    return %c0_i32, %c0_i32_0 : i32, i32
  }
  func.func @transform_5(%arg0: i32) -> (i32, i32) {
    %c0_i32 = arith.constant 0 : i32
    %c0_i32_0 = arith.constant 0 : i32
    %c0_i32_1 = arith.constant 0 : i32
    return %c0_i32, %c0_i32_0 : i32, i32
  }
  func.func @transform_6(%arg0: i32) -> (i32, i32) {
    %c0_i32 = arith.constant 0 : i32
    %c0_i32_0 = arith.constant 0 : i32
    %c0_i32_1 = arith.constant 0 : i32
    return %c0_i32, %c0_i32_0 : i32, i32
  }
  func.func @transform_7(%arg0: i32) -> i32 {
    %c0_i32 = arith.constant 0 : i32
    %c0_i32_0 = arith.constant 0 : i32
    return %c0_i32 : i32
  }
  func.func @transform_8(%arg0: i32) -> (i32, i32) {
    %c0_i32 = arith.constant 0 : i32
    %c0_i32_0 = arith.constant 0 : i32
    return %arg0, %c0_i32 : i32, i32
  }
}

</mosaic_0001>

<bundles_post_ra>
// kernel: tpu_custom_call.1
= control target key start
LH: loop header
LB: loop body
LE: loop exit
PB: predicated region body
PF: predicated region fallthrough
CT: control target
= control target key end

     0   :  { %14 = vsyncpa [#allocation4], 0  ;;  %s461_s0 = inlined_call_operand.vmem [shape: f32[8,27], index: 0, kind: input, shape index: {}]   ;;  %s462_s1 = inlined_call_operand.hbm [shape: f32[27,100], index: 1, kind: input, shape index: {}]   ;;  %s463_s2 = inlined_call_operand.vmem [shape: f32[1,100], index: 2, kind: input, shape index: {}]   ;;  %s464_s3 = inlined_call_operand.vmem [shape: f32[50,50], index: 3, kind: input, shape index: {}]   ;;  %s465_s4 = inlined_call_operand.vmem [shape: f32[1,50], index: 4, kind: input, shape index: {}]   ;;  %s466_s5 = inlined_call_operand.vmem [shape: f32[50,16], index: 5, kind: input, shape index: {}]   ;;  %s467_s6 = inlined_call_operand.vmem [shape: f32[1,16], index: 6, kind: input, shape index: {}]   ;;  %s468_s7 = inlined_call_operand.<no memory space> [shape: f32[1], index: 7, kind: input, shape index: {}]   ;;  %s469_s8 = inlined_call_operand.hbm [shape: f32[8,16], index: 8, kind: output, shape index: {}]  }
   0x1   :  { %15 = vsyncpa [#allocation5], 0  ;;  %s22_s29 = sshll.u32 %s462_s1, 4  ;;  %s342_s30 = smov [#allocation3]   ;;  %s23_s29 = int_to_ptr.hbm [resolvable:$true] %s22_s29 }
   0x2   :  { %s24_s9 = sshll.u32 %s342_s30, 4  ;;  %s343_s10 = smov 128   ;;  %s25_s9 = int_to_ptr.vmem [resolvable:$true] %s24_s9 }
   0x3   :  { %s344_s11 = smov 8  }
   0x4   :  { %30 = dma.hbm_to_vmem [thread:$0]  %s23_s29, 512, %s25_s9, [#allocation4], %s343_s10, %s343_s10, %s344_s11  }
   0x5   :  { %338 = dma.done.wait [#allocation4], 512  }
   0x6   :  { %339 = vsyncadd [#allocation4], 4294966784  ;;  %vm60_vm0 = vcmask 1042432   ;;  %v51_v0 = vld [vmem:[#allocation3 + $0x18] sm:$0x7]  ;;  %v50_v1 = vld [vmem:[#allocation3 + $0x10] sm:$0xff] }
   0x7   :  { %264 = vmatpush.msk.msra.mxu0 %vm60_vm0, %v51_v0  ;;  %v49_v2 = vld [vmem:[#allocation3 + $0x8] sm:$0xff]  ;;  %v48_v3 = vld [vmem:[#allocation3] sm:$0xff]  ;;  %vm56_vm1 = vcmask 220160   ;;  %v95_v5 = vld [vmem:[%s464_s3 + $0x30] sm:$0x3]  ;;  %vm104_vm2 = vcmask 1041408  }
   0x8   :  { %v47_v4 = vld [vmem:[%s461_s0] sm:$0xff]  ;;  %v94_v6 = vld [vmem:[%s464_s3 + $0x28] sm:$0xff]  ;;  %266 = vmatpush.msk.msra.mxu1 %vm104_vm2, %v95_v5  ;;  %v92_v8 = vld [vmem:[%s464_s3 + $0x18] sm:$0xff]  ;;  %s345_s26 = smov 78   ;;  %vm100_vm3 = vcmask 408576   ;;  %s346_s19 = smov 127  }
   0x9   :  { %77 = vmatpush.msra.mxu0 %v50_v1  ;;  %v93_v7 = vld [vmem:[%s464_s3 + $0x20] sm:$0xff]  ;;  %v91_v9 = vld [vmem:[%s464_s3 + $0x10] sm:$0xff]  ;;  %v90_v10 = vld [vmem:[%s464_s3 + $0x8] sm:$0xff]  ;;  %s347_s21 = smov 1   ;;  %s348_s22 = smov [#allocation6]  }
   0xa   :  { %118 = vmatpush.msra.mxu1 %v94_v6  ;;  %v277_v11 = vld [vmem:[%s463_s2] ss:$0 sm:$0xff]  ;;  %v151_v17 = vld [vmem:[%s466_s5 + $0x30] sm:$0x3]  ;;  %v150_v18 = vld [vmem:[%s466_s5 + $0x28] sm:$0xff]  ;;  %s252_s23 = sshll.u32 %s348_s22, 4  ;;  %s253_s23 = int_to_ptr.vmem [resolvable:$true] %s252_s23 }
   0xb   :  { %78 = vmatpush.msra.mxu0 %v49_v2  ;;  %v89_v14 = vld [vmem:[%s464_s3] sm:$0xff]  ;;  %268 = vmatpush.msk.msra.mxu2 %vm104_vm2, %v151_v17  ;;  %v148_v20 = vld [vmem:[%s466_s5 + $0x18] sm:$0xff]  ;;  %v147_v21 = vld [vmem:[%s466_s5 + $0x10] sm:$0xff]  ;;  %vm239_vm2 = vcmask 105472  }
   0xc   :  { %119 = vmatpush.msra.mxu1 %v93_v7  ;;  %v149_v19 = vld [vmem:[%s466_s5 + $0x20] sm:$0xff]  ;;  %v146_v22 = vld [vmem:[%s466_s5 + $0x8] sm:$0xff] }
   0xd   :  { %79 = vmatpush.msra.mxu0 %v48_v3  ;;  %172 = vmatpush.msra.mxu2 %v150_v18  ;;  %v145_v23 = vld [vmem:[%s466_s5] sm:$0xff] }
   0xe   :  { %265 = vmatmul.msk.f32.vlgmr.msra.gmra.mxu0 %vm56_vm1, %v47_v4  ;;  %120 = vmatpush.msra.mxu1 %v92_v8  ;;  %v278_v24 = vld [vmem:[%s465_s4] ss:$0 sm:$0xff] }
   0xf   :  { %173 = vmatpush.msra.mxu2 %v149_v19  ;;  %v279_v40 = vld [vmem:[%s467_s6] ss:$0 sm:$0xff] }
  0x10   :  { %121 = vmatpush.msra.mxu1 %v91_v9 }
  0x11   :  { %174 = vmatpush.msra.mxu2 %v148_v20 }
  0x12   :  { %122 = vmatpush.msra.mxu1 %v90_v10 }
  0x13   :  { %175 = vmatpush.msra.mxu2 %v147_v21 }
  0x14   :  { %123 = vmatpush.msra.mxu1 %v89_v14  ;;  %v233_v14 = vstv %s468_s7 }
  0x15   :  { %176 = vmatpush.msra.mxu2 %v146_v22 }
  0x17   :  { %177 = vmatpush.msra.mxu2 %v145_v23 }
  0x8b   :  { %v81_v12 = vpop.f32.mrf.mxu0 }
  0x8c   :  { %v82_v13 = vadd.f32 %v277_v11, %v81_v12 }
  0x8e   :  { %85 = vrot.lane.b32.xlu0 %v82_v13, %s345_s26  ;;  %s254_s26 = sshll.u32 %s469_s8, 4  ;;  %s255_s26 = int_to_ptr.hbm [resolvable:$true] %s254_s26 }
 0x100   :  { %v86_v15 = vpop.permute.xlu0 %85 }
 0x101   :  { %v88_v16 = vmul.f32 %v86_v15, %v82_v13 }
 0x103   :  { %267 = vmatmul.msk.f32.vlgmr.msra.gmra.mxu1 %vm100_vm3, %v88_v16 }
 0x180   :  { %v125_v25 = vpop.f32.mrf.mxu1 }
 0x181   :  { %v126_v26 = vadd.f32 %v278_v24, %v125_v25 }
 0x183   :  { %v128_v27 = vand.u32 2147483647, %v126_v26 }
 0x185   :  { %v129_v28 = vadd.f32 1.0, %v128_v27 }
 0x187   :  { %280 = vrcp.f32 %v129_v28  ;;  %v141_v32 = vand.u32 2147483648, %v129_v28  ;;  %v139_v34 = vand.u32 2147483647, %v129_v28  ;;  %vm135_vm5 = vweird.f32 %v129_v28 }
 0x189   :  { %v142_v36 = vor.u32 1.1754944e-38, %v141_v32  ;;  %vm140_vm7 = vcmp.eq.f32.partialorder %v139_v34, 8.507059e+37 }
 0x18d   :  { %v281_v29 = vpop.eup %280 }
 0x18e   :  { %v131_v30 = vmul.f32 %v281_v29, %v129_v28  ;;  %vm136_vm4 = vweird.f32 %v281_v29 }
 0x18f   :  { %vm137_vm6 = vmor %vm135_vm5, %vm136_vm4  ;;  %vm243_vm4 = vcmask 121856   ;;  %vm245_vm5 = vcmask 130048  }
 0x190   :  { %v132_v31 = vsub.f32 1.0, %v131_v30 }
 0x192   :  { %v133_v33 = vmul.f32 %v281_v29, %v132_v31 }
 0x194   :  { %v134_v35 = vadd.f32 %v281_v29, %v133_v33 }
 0x196   :  { %v138_v37 = vsel %vm137_vm6, %v281_v29, %v134_v35 }
 0x197   :  { %v143_v38 = vsel %vm140_vm7, %v142_v36, %v138_v37 }
 0x198   :  { %v144_v39 = vmul.f32 %v143_v38, %v126_v26 }
 0x19a   :  { %269 = vmatmul.msk.f32.vlgmr.msra.gmra.mxu2 %vm100_vm3, %v144_v39  ;;  %vm241_vm3 = vcmask 113664  }
 0x21d   :  { %v179_v41 = vpop.f32.mrf.mxu2 }
 0x21e   :  { %v180_v42 = vadd.f32 %v279_v40, %v179_v41 }
 0x220   :  { %v200_v43 = vmin.f32 %v180_v42, 20.0  ;;  %vm199_vm9 = vcmp.gt.f32.partialorder %v180_v42, 20.0  ;;  %v182_v55 = vand.u32 2147483647, %v180_v42 }
 0x222   :  { %v201_v44 = vmul.f32 1.442695, %v200_v43  ;;  %v183_v56 = vadd.f32 1.0, %v182_v55 }
 0x224   :  { %282 = vpow2.f32 %v201_v44  ;;  %v195_v1 = vand.u32 2147483648, %v183_v56  ;;  %vm189_vm11 = vweird.f32 %v183_v56  ;;  %v193_v3 = vand.u32 2147483647, %v183_v56 }
 0x226   :  { %v196_v8 = vor.u32 1.1754944e-38, %v195_v1  ;;  %vm194_vm15 = vcmp.eq.f32.partialorder %v193_v3, 8.507059e+37 }
 0x22a   :  { %v283_v45 = vpop.eup %282 }
 0x22b   :  { %v203_v46 = vadd.f32 1.0, %v283_v45  ;;  %v206_v47 = vmul.f32 -0.5, %v283_v45  ;;  %v209_v49 = vand.u32 2147483647, %v283_v45 }
 0x22d   :  { %284 = vlog2.f32 %v203_v46  ;;  %v207_v48 = vadd.f32 1.0, %v206_v47  ;;  %vm210_vm8 = vcmp.lt.f32.partialorder %v209_v49, 0.0004427343 }
 0x22e   :  { %286 = vrcp.f32 %v183_v56 }
 0x22f   :  { %v208_v52 = vmul.f32 %v283_v45, %v207_v48 }
 0x233   :  { %v285_v50 = vpop.eup %284 }
 0x234   :  { %v205_v51 = vmul.f32 0.6931472, %v285_v50  ;;  %v287_v57 = vpop.eup %286 }
 0x235   :  { %v185_v58 = vmul.f32 %v287_v57, %v183_v56  ;;  %vm190_vm10 = vweird.f32 %v287_v57 }
 0x236   :  { %v211_v53 = vsel %vm210_vm8, %v208_v52, %v205_v51  ;;  %vm191_vm12 = vmor %vm189_vm11, %vm190_vm10 }
 0x237   :  { %v212_v54 = vsel %vm199_vm9, %v180_v42, %v211_v53  ;;  %v186_v60 = vsub.f32 1.0, %v185_v58 }
 0x238   :  { %214 = vrot.lane.b32.xlu0 %v212_v54, %s346_s19 }
 0x239   :  { %v187_v61 = vmul.f32 %v287_v57, %v186_v60 }
 0x23b   :  { %v188_v0 = vadd.f32 %v287_v57, %v187_v61 }
 0x23d   :  { %v192_v7 = vsel %vm191_vm12, %v287_v57, %v188_v0 }
 0x23e   :  { %v197_v11 = vsel %vm194_vm15, %v196_v8, %v192_v7 }
 0x23f   :  { %v198_v16 = vmul.f32 %v197_v11, %v180_v42 }
 0x2aa   :  { %v215_v59 = vpop.permute.xlu0 %214 }
 0x2ab   :  { %288 = vrcp.f32 %v215_v59  ;;  %v228_v4 = vand.u32 2147483648, %v215_v59  ;;  %v226_v6 = vand.u32 2147483647, %v215_v59  ;;  %vm222_vm14 = vweird.f32 %v215_v59 }
 0x2ad   :  { %v229_v10 = vor.u32 1.1754944e-38, %v228_v4  ;;  %vm227_vm1 = vcmp.eq.f32.partialorder %v226_v6, 8.507059e+37 }
 0x2b1   :  { %v289_v62 = vpop.eup %288 }
 0x2b2   :  { %v218_v63 = vmul.f32 %v289_v62, %v215_v59  ;;  %vm223_vm13 = vweird.f32 %v289_v62 }
 0x2b3   :  { %vm224_vm0 = vmor %vm222_vm14, %vm223_vm13 }
 0x2b4   :  { %v219_v2 = vsub.f32 1.0, %v218_v63 }
 0x2b6   :  { %v220_v5 = vmul.f32 %v289_v62, %v219_v2 }
 0x2b8   :  { %v221_v9 = vadd.f32 %v289_v62, %v220_v5 }
 0x2ba   :  { %v225_v12 = vsel %vm224_vm0, %v289_v62, %v221_v9 }
 0x2bb   :  { %v230_v13 = vsel %vm227_vm1, %v229_v10, %v225_v12 }
 0x2bc   :  { %v231_v15 = vmul.f32 %v230_v13, %v212_v54 }
 0x2be   :  { %v234_v17 = vmul.f32 %v233_v14, %v231_v15  ;;  %v240_v18 = vsel %vm239_vm2, %v198_v16, %v231_v15 }
 0x2c0   :  { %236 = vrot.lane.b32.xlu1 %v234_v17, %s347_s21 }
 0x332   :  { %v237_v19 = vpop.permute.xlu1 %236 }
 0x333   :  { %v242_v20 = vsel %vm241_vm3, %v240_v18, %v237_v19 }
 0x334   :  { %v244_v21 = vsel %vm243_vm4, %v242_v20, 0.0 }
 0x335   :  { %246 = vst.msk [vmem:[#allocation6] sm:$0xff] %vm245_vm5, %v244_v21 }
 0x336   :  { %257 = dma.vmem_to_hbm [thread:$0]  %s253_s23, 128, %s255_s26, [#allocation5]  }
 0x337   :  { %340 = dma.done.wait [#allocation5], 128  }
 0x338   :  { %341 = vsyncadd [#allocation5], 4294967168 }
 0x339   :  { %262 = vsyncpa [#allocation4], 1 }
 0x33a   :  { %263 = vsyncpa [#allocation5], 1 }

</bundles_post_ra>
